<compile_context>
chip_gen: v5e
topology: v5e:2x2
jax: 0.10.0
libtpu: 0.0.40
codegen_flags: <defaults>
</compile_context>

<pallas_src>
import functools
import math

import jax
import jax.numpy as jnp
from jax import lax
from jax.experimental import pallas as pl
from jax.experimental.pallas import tpu as pltpu


def _xlogx(v: float) -> float:
    # KLDivLoss treats t*log(t) as 0 when t == 0 (handles smoothing == 0 / == 1 edge cases).
    return 0.0 if v <= 0.0 else float(v) * math.log(float(v))


def _label_smoothing_kernel(x_ref, tgt_ref, out_ref, *, size, padding_idx,
                            smooth_val, conf_minus_smooth, row_const):
    x = x_ref[...].astype(jnp.float32)            # (TN, V) log-probs (upcast in-kernel)
    tgt = tgt_ref[...]                            # (TN, 1) int32

    pad_mask = tgt == padding_idx                 # (TN, 1)
    tgt_safe = jnp.where(pad_mask, 0, tgt)        # (TN, 1)

    tn = x.shape[0]
    col = lax.broadcasted_iota(jnp.int32, (tn, size), 1)
    onehot = col == tgt_safe                      # (TN, V)

    row_sum = jnp.sum(x, axis=-1, keepdims=True)                             # (TN, 1)
    x_tgt = jnp.sum(jnp.where(onehot, x, jnp.float32(0.0)),
                    axis=-1, keepdims=True)                                  # (TN, 1)

    per_row = (jnp.float32(row_const)
               - jnp.float32(smooth_val) * row_sum
               - jnp.float32(conf_minus_smooth) * x_tgt)                     # (TN, 1)

    out_ref[...] = jnp.where(pad_mask, jnp.float32(0.0), per_row)


def label_smoothing_loss(x, target, *, size, padding_idx, smoothing, row_tile=None):
    """x: (N, size) log-probs (f32 or bf16, passed through untouched);
    target: (N,) integer class ids. Returns scalar float32 loss (reduction='sum')."""
    n, v = x.shape
    assert v == size
    confidence = 1.0 - smoothing
    smooth_val = smoothing / (size - 1)
    row_const = _xlogx(confidence) + (size - 1) * _xlogx(smooth_val)

    # Pick a row tile giving ~4 MiB input blocks (mem-bound sweet spot), a multiple of 8,
    # small enough to double-buffer comfortably on every TPU generation's VMEM budget.
    if row_tile is None:
        bytes_per_row = size * jnp.dtype(x.dtype).itemsize
        row_tile = max(8, (4 * 1024 * 1024) // max(bytes_per_row, 1))
        row_tile = min(row_tile, ((n + 7) // 8) * 8)
        row_tile = max(8, (row_tile // 8) * 8)

    # Pad the token axis so the grid divides exactly; padded rows carry padding_idx targets
    # (and zero x) so they contribute exactly 0 to the loss.
    n_pad = ((n + row_tile - 1) // row_tile) * row_tile
    if n_pad != n:
        x = jnp.pad(x, ((0, n_pad - n), (0, 0)))
        target = jnp.pad(target, (0, n_pad - n), constant_values=padding_idx)
    tgt2d = target.reshape(n_pad, 1).astype(jnp.int32)

    kernel = functools.partial(
        _label_smoothing_kernel,
        size=size, padding_idx=padding_idx,
        smooth_val=smooth_val, conf_minus_smooth=confidence - smooth_val,
        row_const=row_const)

    # TODO(synk): for very large vocab (V >= ~128K) add a second ("arbitrary") grid axis
    # over V so row tiles can stay large without exceeding v7x's 64 MiB VMEM.
    per_row = pl.pallas_call(
        kernel,
        out_shape=jax.ShapeDtypeStruct((n_pad, 1), jnp.float32),
        grid_spec=pltpu.PrefetchScalarGridSpec(
            num_scalar_prefetch=0,
            grid=(n_pad // row_tile,),
            in_specs=[
                pl.BlockSpec((row_tile, size), lambda i: (i, 0)),
                pl.BlockSpec((row_tile, 1), lambda i: (i, 0)),
            ],
            out_specs=pl.BlockSpec((row_tile, 1), lambda i: (i, 0)),
        ),
        compiler_params=pltpu.CompilerParams(
            # Independent per-tile partial losses: no resident accumulator, so the grid
            # axis can shard across TensorCores on v7x; final reduce is in the wrapper.
            dimension_semantics=("parallel",),
            # Above the 16/32 MiB scoped defaults, below v7x's 64 MiB physical VMEM.
            vmem_limit_bytes=48 * 1024 * 1024),
    )(x, tgt2d)

    return jnp.sum(per_row)


def _reference(x, target, *, size, padding_idx, smoothing):
    confidence = 1.0 - smoothing
    n = x.shape[0]
    tgt_safe = jnp.where(target == padding_idx, 0, target)
    true_dist = jnp.full((n, size), smoothing / (size - 1), jnp.float32)
    true_dist = true_dist.at[jnp.arange(n), tgt_safe].set(confidence)
    true_dist = jnp.where((target == padding_idx)[:, None], 0.0, true_dist)
    kl = jnp.where(true_dist > 0,
                   true_dist * (jnp.log(jnp.where(true_dist > 0, true_dist, 1.0)) - x),
                   0.0)
    return jnp.sum(kl)


if __name__ == "__main__":
    SIZE = 32          # vocab size (x.size(1) == self.size)
    N = 16             # number of tokens (rows)
    PADDING_IDX = 0
    SMOOTHING = 0.1

    key = jax.random.PRNGKey(0)
    k1, k2 = jax.random.split(key)

    logits = jax.random.normal(k1, (N, SIZE), dtype=jnp.float32)
    x = jax.nn.log_softmax(logits, axis=-1)          # KLDivLoss expects log-probs as input
    target = jax.random.randint(k2, (N,), 0, SIZE, dtype=jnp.int32)
    target = target.at[jnp.array([3, 7])].set(PADDING_IDX)  # include some padded positions

    loss = label_smoothing_loss(x, target, size=SIZE, padding_idx=PADDING_IDX,
                                smoothing=SMOOTHING)
    loss = jax.block_until_ready(loss)

    ref = _reference(x, target, size=SIZE, padding_idx=PADDING_IDX, smoothing=SMOOTHING)
    assert jnp.allclose(loss, ref, rtol=1e-4, atol=1e-4), (loss, ref)

    print("KERNEL_OK")
</pallas_src>

<mosaic_0001>
module attributes {stable_mosaic.version = 11 : i64} {
  func.func @_label_smoothing_kernel(%arg0: i32, %arg1: memref<16x32xf32, #tpu.memory_space<vmem>>, %arg2: memref<16x1xi32, #tpu.memory_space<vmem>>, %arg3: memref<16x1xf32, #tpu.memory_space<vmem>>) attributes {dimension_semantics = [#tpu.dimension_semantics<parallel>], iteration_bounds = array<i64: 1>, scalar_prefetch = 0 : i64, scratch_operands = 0 : i64, tpu.core_type = #tpu.core_type<tc>, window_params = [{transform_indices = @transform_0, window_bounds = array<i64: 16, 32>}, {transform_indices = @transform_1, window_bounds = array<i64: 16, 1>}, {transform_indices = @transform_2, window_bounds = array<i64: 16, 1>}]} {
    %c0 = arith.constant 0 : index
    %c0_0 = arith.constant 0 : index
    %0 = vector.load %arg1[%c0, %c0_0] : memref<16x32xf32, #tpu.memory_space<vmem>>, vector<16x32xf32>
    %c0_1 = arith.constant 0 : index
    %c0_2 = arith.constant 0 : index
    %1 = vector.load %arg2[%c0_1, %c0_2] : memref<16x1xi32, #tpu.memory_space<vmem>>, vector<16x1xi32>
    %c0_i32 = arith.constant 0 : i32
    %2 = vector.broadcast %c0_i32 : i32 to vector<16x1xi32>
    %3 = arith.cmpi eq, %1, %2 : vector<16x1xi32>
    %c0_i32_3 = arith.constant 0 : i32
    %4 = vector.broadcast %c0_i32_3 : i32 to vector<16x1xi32>
    %5 = arith.select %3, %4, %1 : vector<16x1xi1>, vector<16x1xi32>
    %6 = tpu.iota {dimensions = array<i32: 1>} : vector<16x32xi32>
    %7 = vector.broadcast %5 : vector<16x1xi32> to vector<16x32xi32>
    %8 = arith.cmpi eq, %6, %7 : vector<16x32xi32>
    %cst = arith.constant dense<0.000000e+00> : vector<16xf32>
    %9 = vector.multi_reduction <add>, %0, %cst [1] : vector<16x32xf32> to vector<16xf32>
    %10 = vector.shape_cast %9 : vector<16xf32> to vector<16x1xf32>
    %cst_4 = arith.constant 0.000000e+00 : f32
    %11 = vector.broadcast %cst_4 : f32 to vector<16x32xf32>
    %12 = arith.select %8, %0, %11 : vector<16x32xi1>, vector<16x32xf32>
    %cst_5 = arith.constant dense<0.000000e+00> : vector<16xf32>
    %13 = vector.multi_reduction <add>, %12, %cst_5 [1] : vector<16x32xf32> to vector<16xf32>
    %14 = vector.shape_cast %13 : vector<16xf32> to vector<16x1xf32>
    %cst_6 = arith.constant 0.0032258064 : f32
    %15 = vector.broadcast %cst_6 : f32 to vector<16x1xf32>
    %16 = arith.mulf %15, %10 : vector<16x1xf32>
    %cst_7 = arith.constant -0.668481708 : f32
    %17 = vector.broadcast %cst_7 : f32 to vector<16x1xf32>
    %18 = arith.subf %17, %16 : vector<16x1xf32>
    %cst_8 = arith.constant 0.896774172 : f32
    %19 = vector.broadcast %cst_8 : f32 to vector<16x1xf32>
    %20 = arith.mulf %19, %14 : vector<16x1xf32>
    %21 = arith.subf %18, %20 : vector<16x1xf32>
    %cst_9 = arith.constant 0.000000e+00 : f32
    %22 = vector.broadcast %cst_9 : f32 to vector<16x1xf32>
    %23 = arith.select %3, %22, %21 : vector<16x1xi1>, vector<16x1xf32>
    %c0_10 = arith.constant 0 : index
    %c0_11 = arith.constant 0 : index
    %24 = vector.load %arg3[%c0_10, %c0_11] : memref<16x1xf32, #tpu.memory_space<vmem>>, vector<16x1xf32>
    tpu.vector_store %arg3[%c0_10, %c0_11], %23 {strides = array<i32>} : memref<16x1xf32, #tpu.memory_space<vmem>>, vector<16x1xf32>,
    return
  }
  func.func @transform_0(%arg0: i32) -> (i32, i32) {
    %c0_i32 = arith.constant 0 : i32
    %c0_i32_0 = arith.constant 0 : i32
    return %arg0, %c0_i32 : i32, i32
  }
  func.func @transform_1(%arg0: i32) -> (i32, i32) {
    %c0_i32 = arith.constant 0 : i32
    %c0_i32_0 = arith.constant 0 : i32
    return %arg0, %c0_i32 : i32, i32
  }
  func.func @transform_2(%arg0: i32) -> (i32, i32) {
    %c0_i32 = arith.constant 0 : i32
    %c0_i32_0 = arith.constant 0 : i32
    return %arg0, %c0_i32 : i32, i32
  }
}

</mosaic_0001>

<bundles_post_ra>
// kernel: tpu_custom_call.1
= control target key start
LH: loop header
LB: loop body
LE: loop exit
PB: predicated region body
PF: predicated region fallthrough
CT: control target
= control target key end

     0   :  { %v61_v0 = vmov 0   ;;  %vm27_vm0 = vcmask 261120   ;;  %v17_v7 = vlaneseq  ;;  %vm52_vm4 = vcmask 7168   ;;  %s99_s1 = inlined_call_operand.vmem [shape: s32[16,1], index: 1, kind: input, shape index: {}]   ;;  %s100_s0 = inlined_call_operand.vmem [shape: f32[16,32], index: 0, kind: input, shape index: {}]   ;;  %s101_s2 = inlined_call_operand.vmem [shape: f32[16,1], index: 2, kind: output, shape index: {}]  }
   0x1   :  { %60 = vset.pattern.permute.xlu0 %v61_v0  ;;  %v13_v1 = vld [vmem:[%s99_s1] sm:$0xff]  ;;  %v14_v2 = vld [vmem:[%s99_s1 + $0x8] sm:$0xff] }
   0x2   :  { %20 = vperm.xlu0 %60, %v13_v1   ;;  %v11_v3 = vld [vmem:[%s100_s0] sm:$0xff]  ;;  %v12_v5 = vld [vmem:[%s100_s0 + $0x8] sm:$0xff]  ;;  %v18_v8 = vand.u32 127, %v17_v7  ;;  %vm15_vm3 = vcmp.eq.s32.totalorder %v13_v1, 0  ;;  %vm16_vm5 = vcmp.eq.s32.totalorder %v14_v2, 0 }
   0x3   :  { %v28_v4 = vsel %vm27_vm0, %v11_v3, 0.0  ;;  %v31_v6 = vsel %vm27_vm0, %v12_v5, 0.0 }
   0x4   :  { %29 = vadd.xlane.f32.xlu1 %v28_v4 }
   0xa   :  { %23 = vperm.xlu0 %60, %v14_v2  }
   0xc   :  { %32 = vadd.xlane.f32.xlu1 %v31_v6 }
  0x74   :  { %v21_v9 = vpop.permute.xlu0 %20 }
  0x75   :  { %vm25_vm1 = vcmp.eq.s32.totalorder %v18_v8, %v21_v9 }
  0x76   :  { %v34_v10 = vsel %vm25_vm1, %v11_v3, 0.0 }
  0x77   :  { %v36_v11 = vsel %vm27_vm0, %v34_v10, 0.0  ;;  %v30_v15 = vpop.xlane.xlu1 %29 }
  0x78   :  { %37 = vadd.xlane.f32.xlu2 %v36_v11  ;;  %v42_v16 = vmul.f32 0.0032258064, %v30_v15 }
  0x7a   :  { %v44_v17 = vsub.f32 -0.6684817, %v42_v16 }
  0x7c   :  { %v24_v12 = vpop.permute.xlu0 %23 }
  0x7d   :  { %vm26_vm2 = vcmp.eq.s32.totalorder %v18_v8, %v24_v12 }
  0x7e   :  { %v35_v13 = vsel %vm26_vm2, %v12_v5, 0.0 }
  0x7f   :  { %v39_v14 = vsel %vm27_vm0, %v35_v13, 0.0  ;;  %v33_v19 = vpop.xlane.xlu1 %32 }
  0x80   :  { %40 = vadd.xlane.f32.xlu2 %v39_v14  ;;  %v43_v22 = vmul.f32 0.0032258064, %v33_v19 }
  0x82   :  { %v45_v24 = vsub.f32 -0.6684817, %v43_v22 }
  0xeb   :  { %v38_v18 = vpop.xlane.xlu2 %37 }
  0xec   :  { %v46_v20 = vmul.f32 0.8967742, %v38_v18 }
  0xee   :  { %v48_v21 = vsub.f32 %v44_v17, %v46_v20 }
  0xf0   :  { %v50_v23 = vsel %vm15_vm3, 0.0, %v48_v21 }
  0xf1   :  { %53 = vst.msk [vmem:[%s101_s2] sm:$0xff] %vm52_vm4, %v50_v23 }
  0xf3   :  { %v41_v25 = vpop.xlane.xlu2 %40 }
  0xf4   :  { %v47_v26 = vmul.f32 0.8967742, %v41_v25 }
  0xf6   :  { %v49_v27 = vsub.f32 %v45_v24, %v47_v26 }
  0xf8   :  { %v51_v28 = vsel %vm16_vm5, 0.0, %v49_v27 }
  0xf9   :  { %54 = vst.msk [vmem:[%s101_s2 + $0x8] sm:$0xff] %vm52_vm4, %v51_v28 }

</bundles_post_ra>
